<compile_context>
chip_gen: v6e
topology: v6e:2x2x1
jax: 0.10.0
libtpu: 0.0.40
codegen_flags: <defaults>
</compile_context>

<pallas_src>
import functools

import jax
import jax.numpy as jnp
from jax import lax
from jax.experimental import pallas as pl
from jax.experimental.pallas import tpu as pltpu


def _round_up(x: int, m: int) -> int:
    return (x + m - 1) // m * m


def _volume_yolo_loss_kernel(y_true_ref, y_pred_ref, w_ref, o_ref, *,
                             categories: int, box_vector: int,
                             tile_n: int, chunk: int, n_valid: int):
    """One N-tile of the combined YOLO-volume loss.

    y_true_ref / y_pred_ref : (TILE_N, feat)   feat = categories + box_vector
    w_ref                   : (1, feat)        class weights (zero-padded)
    o_ref                   : (8, 128)         lane 0 = xyz+whd+conf SSE partial
                                               lane 1 = sum(w_i * CE_i) partial
                                               lane 2 = sum(w_i) partial
    """
    c = categories
    feat = c + box_vector
    base = pl.program_id(0) * tile_n

    # ---- loop-invariant lane masks (single-vreg, hoisted out of the loop) --
    lane = lax.broadcasted_iota(jnp.int32, (1, feat), 1)
    cls_mask = lane < c                                        # class lanes
    whd_mask = jnp.logical_and(lane >= c + 3, lane < c + 6)    # sqrt lanes
    xyzwhd_mask = jnp.logical_and(lane >= c, lane < c + 6).astype(jnp.float32)
    conf_mask = (lane == feat - 1).astype(jnp.float32)
    w_row = w_ref[...].astype(jnp.float32)                     # (1, feat)
    neg_inf = jnp.float32(-jnp.inf)

    n_chunks = tile_n // chunk

    def body(j, carry):
        reg, num, den = carry
        off = pl.multiple_of(j * chunk, 8)

        yt = y_true_ref[pl.ds(off, chunk), :].astype(jnp.float32)
        yp = y_pred_ref[pl.ds(off, chunk), :].astype(jnp.float32)

        # row-validity mask for the ragged tail (replaces wrapper-side pad);
        # zero invalid rows *before* sqrt/exp so OOB garbage can't make NaNs.
        row = lax.broadcasted_iota(jnp.int32, (chunk, 1), 0)
        valid_b = (base + off + row) < n_valid
        valid_f = valid_b.astype(jnp.float32)
        yt = jnp.where(valid_b, yt, 0.0)
        yp = jnp.where(valid_b, yp, 0.0)

        # ---- regression: xyz + whd (sqrt transform) + confidence ----------
        # TODO(synk): like the PyTorch module, sqrt(whd + 1e-6) is NaN for
        # negative w/h/d values; semantics kept identical on purpose.
        ts = jnp.where(whd_mask, jnp.sqrt(yt + 1e-6), yt)
        ps = jnp.where(whd_mask, jnp.sqrt(yp + 1e-6), yp)
        d_tr = ts - ps                      # transformed diff (xyz + whd)
        d_raw = yt - yp                     # raw diff (confidence)
        reg_c = (jnp.sum(d_tr * d_tr * xyzwhd_mask, keepdims=True)
                 + jnp.sum(d_raw * d_raw * conf_mask, keepdims=True))

        # ---- classification: weighted CE vs argmax(true) over class lanes -
        tm = jnp.where(cls_mask, yt, neg_inf)
        pm = jnp.where(cls_mask, yp, neg_inf)
        t_max = jnp.max(tm, axis=1, keepdims=True)
        cand = jnp.where(tm == t_max, lane, feat)
        tgt = jnp.min(cand, axis=1, keepdims=True)   # first-occurrence argmax
        onehot = (lane == tgt).astype(jnp.float32)   # (chunk, feat)

        m = jnp.max(pm, axis=1, keepdims=True)       # stable log-softmax
        lse = m + jnp.log(jnp.sum(jnp.exp(pm - m), axis=1, keepdims=True))
        picked = jnp.sum(onehot * yp, axis=1, keepdims=True)
        ce = lse - picked                             # (chunk, 1)

        wt = jnp.sum(onehot * w_row, axis=1, keepdims=True) * valid_f
        num_c = jnp.sum(wt * ce, keepdims=True)
        den_c = jnp.sum(wt, keepdims=True)

        return reg + reg_c, num + num_c, den + den_c

    zero = jnp.zeros((1, 1), jnp.float32)
    reg, num, den = lax.fori_loop(0, n_chunks, body, (zero, zero, zero))

    # ---- write lane-dense (8, 128) partials block (unmasked full-tile store)
    lane128 = lax.broadcasted_iota(jnp.int32, (8, 128), 1)
    srow = lax.broadcasted_iota(jnp.int32, (8, 128), 0)
    vals = jnp.where(lane128 == 0, reg,
                     jnp.where(lane128 == 1, num,
                               jnp.where(lane128 == 2, den, 0.0)))
    o_ref[...] = jnp.where(srow == 0, vals, 0.0)


def volume_yolo_loss(y_true, y_pred, categories, box_vector,
                     class_weights_dict=None, tile_n=8192, chunk_n=256):
    """JAX/Pallas equivalent of VolumeYoloLoss.forward (scalar loss)."""
    y_true = jnp.reshape(y_true, y_pred.shape)
    assert y_pred.ndim == 2 and y_pred.shape[-1] == categories + box_vector
    assert box_vector >= 6
    n, feat = y_pred.shape
    c = categories

    if class_weights_dict is not None:
        assert len(class_weights_dict) == categories
        w = [float(class_weights_dict[i]) for i in range(categories)]
    else:
        w = [1.0] * categories
    weights = jnp.asarray([w + [0.0] * box_vector], dtype=jnp.float32)  # (1,feat)

    # tile = per-grid-step DMA granularity; chunk = in-kernel compute slab.
    # Both multiples of 8 (sublanes); tile is a multiple of chunk; the ragged
    # tail is masked inside the kernel (no padding pass over HBM).
    # NOTE: on v7x (64 MiB VMEM/TC) keep tile_n <= ~16384.
    tile = min(int(tile_n), _round_up(n, 8))
    chunk = _round_up(max(8, min(int(chunk_n), tile)), 8)
    tile = _round_up(tile, chunk)
    num_blocks = -(-n // tile)

    kernel = functools.partial(
        _volume_yolo_loss_kernel, categories=c, box_vector=box_vector,
        tile_n=tile, chunk=chunk, n_valid=n)

    itemsize = jnp.dtype(y_pred.dtype).itemsize
    cost = pl.CostEstimate(
        flops=int(35 * num_blocks * tile * feat),
        transcendentals=int(3 * num_blocks * tile * feat),
        bytes_accessed=int(2 * n * feat * itemsize + num_blocks * 8 * 128 * 4))

    # Double-buffered (tile, feat) input blocks are lane-padded to 128 in
    # VMEM; size the scoped limit accordingly (mandatory on v5e's 16 MiB
    # default), capped so huge tiles still fit v6e/v5e while the default tile
    # stays v7x-safe.
    in_buf_bytes = 2 * 2 * tile * 128 * 4
    vmem_limit = min(max(32 * 1024 * 1024, in_buf_bytes + 8 * 1024 * 1024),
                     96 * 1024 * 1024)

    partials = pl.pallas_call(
        kernel,
        out_shape=jax.ShapeDtypeStruct((num_blocks * 8, 128), jnp.float32),
        grid=(num_blocks,),
        in_specs=[
            pl.BlockSpec((tile, feat), lambda i: (i, 0)),
            pl.BlockSpec((tile, feat), lambda i: (i, 0)),
            pl.BlockSpec((1, feat), lambda i: (0, 0)),
        ],
        out_specs=pl.BlockSpec((8, 128), lambda i: (i, 0)),
        compiler_params=pltpu.CompilerParams(
            dimension_semantics=("parallel",),
            vmem_limit_bytes=int(vmem_limit)),
        cost_estimate=cost,
    )(y_true, y_pred, weights)

    partials = partials.reshape(num_blocks, 8, 128)[:, 0, :]
    reg_conf = jnp.sum(partials[:, 0])
    ce_num = jnp.sum(partials[:, 1])
    ce_den = jnp.sum(partials[:, 2])
    return reg_conf + ce_num / ce_den


def _reference_loss(y_true, y_pred, categories, box_vector,
                    class_weights_dict=None):
    """Pure-JAX reference mirroring the PyTorch module (sanity check)."""
    yt = jnp.reshape(y_true, y_pred.shape).astype(jnp.float32)
    yp = y_pred.astype(jnp.float32)
    c = categories
    t_cls, p_cls = yt[:, :c], yp[:, :c]
    t_box, p_box = yt[:, c:], yp[:, c:]
    loss_xyz = jnp.sum((t_box[:, :3] - p_box[:, :3]) ** 2)
    loss_whd = jnp.sum((jnp.sqrt(t_box[:, 3:6] + 1e-6)
                        - jnp.sqrt(p_box[:, 3:6] + 1e-6)) ** 2)
    loss_conf = jnp.sum((t_box[:, -1] - p_box[:, -1]) ** 2)
    tgt = jnp.argmax(t_cls, axis=-1)
    logp = jax.nn.log_softmax(p_cls, axis=-1)
    picked = jnp.take_along_axis(logp, tgt[:, None], axis=-1)[:, 0]
    if class_weights_dict is not None:
        w = jnp.asarray([class_weights_dict[i] for i in range(categories)],
                        dtype=jnp.float32)
    else:
        w = jnp.ones((c,), jnp.float32)
    wt = w[tgt]
    loss_class = -jnp.sum(wt * picked) / jnp.sum(wt)
    return loss_xyz + loss_whd + loss_conf + loss_class


if __name__ == "__main__":
    categories = 4
    box_vector = 7          # x, y, z, w, h, d, conf
    feat = categories + box_vector

    key = jax.random.PRNGKey(0)
    k1, k2, k3, k4 = jax.random.split(key, 4)

    # small, module-consistent shapes; whd kept positive so sqrt is defined
    y_true = jax.random.uniform(k1, (8, feat), dtype=jnp.float32)
    y_pred = jax.random.uniform(k2, (8, feat), dtype=jnp.float32)

    loss = jax.block_until_ready(
        volume_yolo_loss(y_true, y_pred, categories, box_vector))
    ref = jax.block_until_ready(
        _reference_loss(y_true, y_pred, categories, box_vector))
    assert abs(float(loss) - float(ref)) <= 2e-3 * max(1.0, abs(float(ref))), (
        float(loss), float(ref))

    # second case: ragged N (in-kernel tail mask + multiple inner chunks),
    # per-class weights, bf16 inputs (cast to f32 inside the kernel)
    cw = {0: 0.5, 1: 2.0, 2: 1.0, 3: 1.5}
    n2 = 300
    y_true2 = jax.random.uniform(k3, (n2, feat), dtype=jnp.float32)
    y_pred2 = jax.random.uniform(k4, (n2, feat), dtype=jnp.float32)
    yt2_bf, yp2_bf = y_true2.astype(jnp.bfloat16), y_pred2.astype(jnp.bfloat16)

    loss2 = jax.block_until_ready(
        volume_yolo_loss(yt2_bf, yp2_bf, categories, box_vector,
                         class_weights_dict=cw, tile_n=8192, chunk_n=64))
    ref2 = jax.block_until_ready(
        _reference_loss(yt2_bf.astype(jnp.float32), yp2_bf.astype(jnp.float32),
                        categories, box_vector, class_weights_dict=cw))
    assert abs(float(loss2) - float(ref2)) <= 5e-3 * max(1.0, abs(float(ref2))), (
        float(loss2), float(ref2))

    print("KERNEL_OK")
</pallas_src>

<mosaic_0001>
module attributes {stable_mosaic.version = 11 : i64} {
  func.func @_volume_yolo_loss_kernel(%arg0: i32, %arg1: memref<8x11xf32, #tpu.memory_space<vmem>>, %arg2: memref<8x11xf32, #tpu.memory_space<vmem>>, %arg3: memref<1x11xf32, #tpu.memory_space<vmem>>, %arg4: memref<8x128xf32, #tpu.memory_space<vmem>>) attributes {dimension_semantics = [#tpu.dimension_semantics<parallel>], iteration_bounds = array<i64: 1>, scalar_prefetch = 0 : i64, scratch_operands = 0 : i64, tpu.core_type = #tpu.core_type<tc>, window_params = [{transform_indices = @transform_0, window_bounds = array<i64: 8, 11>}, {transform_indices = @transform_1, window_bounds = array<i64: 8, 11>}, {pipeline_mode = #tpu.pipeline_mode<synchronous>, transform_indices = @transform_2, window_bounds = array<i64: 1, 11>}, {transform_indices = @transform_3, window_bounds = array<i64: 8, 128>}]} {
    %c8_i32 = arith.constant 8 : i32
    %0 = arith.muli %arg0, %c8_i32 : i32
    %1 = tpu.iota {dimensions = array<i32: 1>} : vector<1x11xi32>
    %c4_i32 = arith.constant 4 : i32
    %2 = vector.broadcast %c4_i32 : i32 to vector<1x11xi32>
    %3 = arith.cmpi slt, %1, %2 : vector<1x11xi32>
    %c7_i32 = arith.constant 7 : i32
    %4 = vector.broadcast %c7_i32 : i32 to vector<1x11xi32>
    %5 = arith.cmpi sge, %1, %4 : vector<1x11xi32>
    %c10_i32 = arith.constant 10 : i32
    %6 = vector.broadcast %c10_i32 : i32 to vector<1x11xi32>
    %7 = arith.cmpi slt, %1, %6 : vector<1x11xi32>
    %8 = arith.andi %5, %7 : vector<1x11xi1>
    %c4_i32_0 = arith.constant 4 : i32
    %9 = vector.broadcast %c4_i32_0 : i32 to vector<1x11xi32>
    %10 = arith.cmpi sge, %1, %9 : vector<1x11xi32>
    %c10_i32_1 = arith.constant 10 : i32
    %11 = vector.broadcast %c10_i32_1 : i32 to vector<1x11xi32>
    %12 = arith.cmpi slt, %1, %11 : vector<1x11xi32>
    %13 = arith.andi %10, %12 : vector<1x11xi1>
    %14 = arith.extui %13 : vector<1x11xi1> to vector<1x11xi32>
    %15 = arith.sitofp %14 : vector<1x11xi32> to vector<1x11xf32>
    %c10_i32_2 = arith.constant 10 : i32
    %16 = vector.broadcast %c10_i32_2 : i32 to vector<1x11xi32>
    %17 = arith.cmpi eq, %1, %16 : vector<1x11xi32>
    %18 = arith.extui %17 : vector<1x11xi1> to vector<1x11xi32>
    %19 = arith.sitofp %18 : vector<1x11xi32> to vector<1x11xf32>
    %c0 = arith.constant 0 : index
    %c0_3 = arith.constant 0 : index
    %20 = vector.load %arg3[%c0, %c0_3] : memref<1x11xf32, #tpu.memory_space<vmem>>, vector<1x11xf32>
    %cst = arith.constant 0.000000e+00 : f32
    %21 = vector.broadcast %cst : f32 to vector<1x1xf32>
    %cst_4 = arith.constant 0xFF800000 : f32
    %c0_i32 = arith.constant 0 : i32
    %c8_i32_5 = arith.constant 8 : i32
    %22 = arith.muli %c0_i32, %c8_i32_5 : i32
    %23 = tpu.assume_multiple %22, 8 : i32
    %24 = arith.index_cast %23 : i32 to index
    %c0_6 = arith.constant 0 : index
    %25 = vector.load %arg1[%24, %c0_6] : memref<8x11xf32, #tpu.memory_space<vmem>>, vector<8x11xf32>
    %26 = arith.index_cast %23 : i32 to index
    %c0_7 = arith.constant 0 : index
    %27 = vector.load %arg2[%26, %c0_7] : memref<8x11xf32, #tpu.memory_space<vmem>>, vector<8x11xf32>
    %28 = tpu.iota {dimensions = array<i32: 0>} : vector<8x1xi32>
    %29 = arith.addi %0, %23 : i32
    %30 = vector.broadcast %29 : i32 to vector<8x1xi32>
    %31 = arith.addi %30, %28 : vector<8x1xi32>
    %c8_i32_8 = arith.constant 8 : i32
    %32 = vector.broadcast %c8_i32_8 : i32 to vector<8x1xi32>
    %33 = arith.cmpi slt, %31, %32 : vector<8x1xi32>
    %34 = arith.extui %33 : vector<8x1xi1> to vector<8x1xi32>
    %35 = arith.sitofp %34 : vector<8x1xi32> to vector<8x1xf32>
    %cst_9 = arith.constant 0.000000e+00 : f32
    %36 = vector.shape_cast %33 : vector<8x1xi1> to vector<8x1xi1>
    %37 = vector.broadcast %36 : vector<8x1xi1> to vector<8x11xi1>
    %38 = vector.broadcast %cst_9 : f32 to vector<8x11xf32>
    %39 = arith.select %37, %25, %38 : vector<8x11xi1>, vector<8x11xf32>
    %cst_10 = arith.constant 0.000000e+00 : f32
    %40 = vector.shape_cast %33 : vector<8x1xi1> to vector<8x1xi1>
    %41 = vector.broadcast %40 : vector<8x1xi1> to vector<8x11xi1>
    %42 = vector.broadcast %cst_10 : f32 to vector<8x11xf32>
    %43 = arith.select %41, %27, %42 : vector<8x11xi1>, vector<8x11xf32>
    %cst_11 = arith.constant 9.99999997E-7 : f32
    %44 = vector.broadcast %cst_11 : f32 to vector<8x11xf32>
    %45 = arith.addf %39, %44 : vector<8x11xf32>
    %46 = math.sqrt %45 : vector<8x11xf32>
    %47 = vector.shape_cast %8 : vector<1x11xi1> to vector<1x11xi1>
    %48 = vector.broadcast %47 : vector<1x11xi1> to vector<8x11xi1>
    %49 = arith.select %48, %46, %39 : vector<8x11xi1>, vector<8x11xf32>
    %cst_12 = arith.constant 9.99999997E-7 : f32
    %50 = vector.broadcast %cst_12 : f32 to vector<8x11xf32>
    %51 = arith.addf %43, %50 : vector<8x11xf32>
    %52 = math.sqrt %51 : vector<8x11xf32>
    %53 = vector.shape_cast %8 : vector<1x11xi1> to vector<1x11xi1>
    %54 = vector.broadcast %53 : vector<1x11xi1> to vector<8x11xi1>
    %55 = arith.select %54, %52, %43 : vector<8x11xi1>, vector<8x11xf32>
    %56 = arith.subf %49, %55 : vector<8x11xf32>
    %57 = arith.subf %39, %43 : vector<8x11xf32>
    %58 = arith.mulf %56, %56 : vector<8x11xf32>
    %59 = vector.broadcast %15 : vector<1x11xf32> to vector<8x11xf32>
    %60 = arith.mulf %58, %59 : vector<8x11xf32>
    %61 = vector.shape_cast %60 : vector<8x11xf32> to vector<1x8x11xf32>
    %cst_13 = arith.constant dense<0.000000e+00> : vector<1xf32>
    %62 = vector.multi_reduction <add>, %61, %cst_13 [1, 2] : vector<1x8x11xf32> to vector<1xf32>
    %63 = vector.shape_cast %62 : vector<1xf32> to vector<1x1x1xf32>
    %64 = vector.extract %63[0, 0, 0] : f32 from vector<1x1x1xf32>
    %65 = vector.broadcast %64 : f32 to vector<1x1xf32>
    %66 = arith.mulf %57, %57 : vector<8x11xf32>
    %67 = vector.broadcast %19 : vector<1x11xf32> to vector<8x11xf32>
    %68 = arith.mulf %66, %67 : vector<8x11xf32>
    %69 = vector.shape_cast %68 : vector<8x11xf32> to vector<1x8x11xf32>
    %cst_14 = arith.constant dense<0.000000e+00> : vector<1xf32>
    %70 = vector.multi_reduction <add>, %69, %cst_14 [1, 2] : vector<1x8x11xf32> to vector<1xf32>
    %71 = vector.shape_cast %70 : vector<1xf32> to vector<1x1x1xf32>
    %72 = vector.extract %71[0, 0, 0] : f32 from vector<1x1x1xf32>
    %73 = vector.broadcast %72 : f32 to vector<1x1xf32>
    %74 = arith.addf %65, %73 : vector<1x1xf32>
    %75 = vector.shape_cast %3 : vector<1x11xi1> to vector<1x11xi1>
    %76 = vector.broadcast %75 : vector<1x11xi1> to vector<8x11xi1>
    %77 = vector.broadcast %cst_4 : f32 to vector<8x11xf32>
    %78 = arith.select %76, %39, %77 : vector<8x11xi1>, vector<8x11xf32>
    %79 = vector.shape_cast %3 : vector<1x11xi1> to vector<1x11xi1>
    %80 = vector.broadcast %79 : vector<1x11xi1> to vector<8x11xi1>
    %81 = vector.broadcast %cst_4 : f32 to vector<8x11xf32>
    %82 = arith.select %80, %43, %81 : vector<8x11xi1>, vector<8x11xf32>
    %cst_15 = arith.constant dense<0xFF800000> : vector<8xf32>
    %83 = vector.multi_reduction <maximumf>, %78, %cst_15 [1] : vector<8x11xf32> to vector<8xf32>
    %84 = vector.shape_cast %83 : vector<8xf32> to vector<8x1xf32>
    %85 = vector.broadcast %84 : vector<8x1xf32> to vector<8x11xf32>
    %86 = arith.cmpf oeq, %78, %85 : vector<8x11xf32>
    %c11_i32 = arith.constant 11 : i32
    %87 = vector.shape_cast %1 : vector<1x11xi32> to vector<1x11xi32>
    %88 = vector.broadcast %87 : vector<1x11xi32> to vector<8x11xi32>
    %89 = vector.broadcast %c11_i32 : i32 to vector<8x11xi32>
    %90 = arith.select %86, %88, %89 : vector<8x11xi1>, vector<8x11xi32>
    %cst_16 = arith.constant dense<2147483647> : vector<8xi32>
    %91 = vector.multi_reduction <minsi>, %90, %cst_16 [1] : vector<8x11xi32> to vector<8xi32>
    %92 = vector.shape_cast %91 : vector<8xi32> to vector<8x1xi32>
    %93 = vector.broadcast %1 : vector<1x11xi32> to vector<8x11xi32>
    %94 = vector.broadcast %92 : vector<8x1xi32> to vector<8x11xi32>
    %95 = arith.cmpi eq, %93, %94 : vector<8x11xi32>
    %96 = arith.extui %95 : vector<8x11xi1> to vector<8x11xi32>
    %97 = arith.sitofp %96 : vector<8x11xi32> to vector<8x11xf32>
    %cst_17 = arith.constant dense<0xFF800000> : vector<8xf32>
    %98 = vector.multi_reduction <maximumf>, %82, %cst_17 [1] : vector<8x11xf32> to vector<8xf32>
    %99 = vector.shape_cast %98 : vector<8xf32> to vector<8x1xf32>
    %100 = vector.broadcast %99 : vector<8x1xf32> to vector<8x11xf32>
    %101 = arith.subf %82, %100 : vector<8x11xf32>
    %102 = math.exp %101 : vector<8x11xf32>
    %cst_18 = arith.constant dense<0.000000e+00> : vector<8xf32>
    %103 = vector.multi_reduction <add>, %102, %cst_18 [1] : vector<8x11xf32> to vector<8xf32>
    %104 = vector.shape_cast %103 : vector<8xf32> to vector<8x1xf32>
    %105 = math.log %104 : vector<8x1xf32>
    %106 = arith.addf %99, %105 : vector<8x1xf32>
    %107 = arith.mulf %97, %43 : vector<8x11xf32>
    %cst_19 = arith.constant dense<0.000000e+00> : vector<8xf32>
    %108 = vector.multi_reduction <add>, %107, %cst_19 [1] : vector<8x11xf32> to vector<8xf32>
    %109 = vector.shape_cast %108 : vector<8xf32> to vector<8x1xf32>
    %110 = arith.subf %106, %109 : vector<8x1xf32>
    %111 = vector.broadcast %20 : vector<1x11xf32> to vector<8x11xf32>
    %112 = arith.mulf %97, %111 : vector<8x11xf32>
    %cst_20 = arith.constant dense<0.000000e+00> : vector<8xf32>
    %113 = vector.multi_reduction <add>, %112, %cst_20 [1] : vector<8x11xf32> to vector<8xf32>
    %114 = vector.shape_cast %113 : vector<8xf32> to vector<8x1xf32>
    %115 = arith.mulf %114, %35 : vector<8x1xf32>
    %116 = arith.mulf %115, %110 : vector<8x1xf32>
    %117 = vector.shape_cast %116 : vector<8x1xf32> to vector<1x8x1xf32>
    %cst_21 = arith.constant dense<0.000000e+00> : vector<1xf32>
    %118 = vector.multi_reduction <add>, %117, %cst_21 [1, 2] : vector<1x8x1xf32> to vector<1xf32>
    %119 = vector.shape_cast %118 : vector<1xf32> to vector<1x1x1xf32>
    %120 = vector.extract %119[0, 0, 0] : f32 from vector<1x1x1xf32>
    %121 = vector.broadcast %120 : f32 to vector<1x1xf32>
    %122 = vector.shape_cast %115 : vector<8x1xf32> to vector<1x8x1xf32>
    %cst_22 = arith.constant dense<0.000000e+00> : vector<1xf32>
    %123 = vector.multi_reduction <add>, %122, %cst_22 [1, 2] : vector<1x8x1xf32> to vector<1xf32>
    %124 = vector.shape_cast %123 : vector<1xf32> to vector<1x1x1xf32>
    %125 = vector.extract %124[0, 0, 0] : f32 from vector<1x1x1xf32>
    %126 = vector.broadcast %125 : f32 to vector<1x1xf32>
    %127 = arith.addf %21, %74 : vector<1x1xf32>
    %128 = arith.addf %21, %121 : vector<1x1xf32>
    %129 = arith.addf %21, %126 : vector<1x1xf32>
    %c1_i32 = arith.constant 1 : i32
    %130 = tpu.iota {dimensions = array<i32: 1>} : vector<8x128xi32>
    %131 = tpu.iota {dimensions = array<i32: 0>} : vector<8x128xi32>
    %c0_i32_23 = arith.constant 0 : i32
    %132 = vector.broadcast %c0_i32_23 : i32 to vector<8x128xi32>
    %133 = arith.cmpi eq, %130, %132 : vector<8x128xi32>
    %c1_i32_24 = arith.constant 1 : i32
    %134 = vector.broadcast %c1_i32_24 : i32 to vector<8x128xi32>
    %135 = arith.cmpi eq, %130, %134 : vector<8x128xi32>
    %c2_i32 = arith.constant 2 : i32
    %136 = vector.broadcast %c2_i32 : i32 to vector<8x128xi32>
    %137 = arith.cmpi eq, %130, %136 : vector<8x128xi32>
    %cst_25 = arith.constant 0.000000e+00 : f32
    %138 = vector.shape_cast %129 : vector<1x1xf32> to vector<1x1xf32>
    %139 = vector.broadcast %138 : vector<1x1xf32> to vector<8x128xf32>
    %140 = vector.broadcast %cst_25 : f32 to vector<8x128xf32>
    %141 = arith.select %137, %139, %140 : vector<8x128xi1>, vector<8x128xf32>
    %142 = vector.shape_cast %128 : vector<1x1xf32> to vector<1x1xf32>
    %143 = vector.broadcast %142 : vector<1x1xf32> to vector<8x128xf32>
    %144 = arith.select %135, %143, %141 : vector<8x128xi1>, vector<8x128xf32>
    %145 = vector.shape_cast %127 : vector<1x1xf32> to vector<1x1xf32>
    %146 = vector.broadcast %145 : vector<1x1xf32> to vector<8x128xf32>
    %147 = arith.select %133, %146, %144 : vector<8x128xi1>, vector<8x128xf32>
    %c0_i32_26 = arith.constant 0 : i32
    %148 = vector.broadcast %c0_i32_26 : i32 to vector<8x128xi32>
    %149 = arith.cmpi eq, %131, %148 : vector<8x128xi32>
    %cst_27 = arith.constant 0.000000e+00 : f32
    %150 = vector.broadcast %cst_27 : f32 to vector<8x128xf32>
    %151 = arith.select %149, %147, %150 : vector<8x128xi1>, vector<8x128xf32>
    %c0_28 = arith.constant 0 : index
    %c0_29 = arith.constant 0 : index
    %152 = vector.load %arg4[%c0_28, %c0_29] : memref<8x128xf32, #tpu.memory_space<vmem>>, vector<8x128xf32>
    tpu.vector_store %arg4[%c0_28, %c0_29], %151 {strides = array<i32>} : memref<8x128xf32, #tpu.memory_space<vmem>>, vector<8x128xf32>,
    return
  }
  func.func @transform_0(%arg0: i32) -> (i32, i32) {
    %c0_i32 = arith.constant 0 : i32
    %c0_i32_0 = arith.constant 0 : i32
    return %arg0, %c0_i32 : i32, i32
  }
  func.func @transform_1(%arg0: i32) -> (i32, i32) {
    %c0_i32 = arith.constant 0 : i32
    %c0_i32_0 = arith.constant 0 : i32
    return %arg0, %c0_i32 : i32, i32
  }
  func.func @transform_2(%arg0: i32) -> (i32, i32) {
    %c0_i32 = arith.constant 0 : i32
    %c0_i32_0 = arith.constant 0 : i32
    %c0_i32_1 = arith.constant 0 : i32
    return %c0_i32, %c0_i32_0 : i32, i32
  }
  func.func @transform_3(%arg0: i32) -> (i32, i32) {
    %c0_i32 = arith.constant 0 : i32
    %c0_i32_0 = arith.constant 0 : i32
    return %arg0, %c0_i32 : i32, i32
  }
}

</mosaic_0001>

<bundles_post_ra>
// kernel: tpu_custom_call.1
= control target key start
LH: loop header
LB: loop body
LE: loop exit
PB: predicated region body
PF: predicated region fallthrough
CT: control target
= control target key end

     0   :  { %8 = vsyncpa [#allocation3], 0  ;;  %s387_s0 = inlined_call_operand.hbm [shape: f32[8,11], index: 0, kind: input, shape index: {}]   ;;  %s388_s1 = inlined_call_operand.hbm [shape: f32[8,11], index: 1, kind: input, shape index: {}]   ;;  %s389_s2 = inlined_call_operand.vmem [shape: f32[1,11], index: 2, kind: input, shape index: {}]   ;;  %s390_s3 = inlined_call_operand.hbm [shape: f32[8,128], index: 3, kind: output, shape index: {}]  }
   0x1   :  { %9 = vsyncpa [#allocation6], 0 }
   0x2   :  { %10 = vsyncpa [#allocation4], 0  ;;  %s314_s12 = smov [#allocation2]   ;;  %s315_s14 = smov [#allocation5]  }
   0x3   :  { %s17_s13 = sshll.u32 %s314_s12, 4  ;;  %s27_s15 = sshll.u32 %s315_s14, 4  ;;  %s18_s13 = int_to_ptr.vmem [resolvable:$true] %s17_s13  ;;  %s28_s15 = int_to_ptr.vmem [resolvable:$true] %s27_s15 }
   0x4   :  { %s256_s16 = scalar_lea.vmem %s18_s13, 128  ;;  %p261_p1 = scmp.lt.s32.totalorder %s18_s13, %s18_s13 }
   0x5   :  { %p257_p0 = scmp.ne.s32.totalorder %s18_s13, %s256_s16  ;;  %p262_p2 = scmp.lt.s32.totalorder %s256_s16, %s256_s16 }
   0x7   :  { %p263_p3 = por %p262_p2, %p261_p1 }
   0x9   :  { %p264_p4 = pnand %p263_p3, %p257_p0 }
   0xb   :  { %267 = shalt.err (!%p264_p4)
}
   0xc   :  { %20 = dma.hbm_to_vmem [thread:$0]  %s387_s0, 128, %s18_s13, [#allocation3]  }
   0xd   :  { %s276_s19 = scalar_lea.vmem %s28_s15, 128  ;;  %p281_p6 = scmp.lt.s32.totalorder %s28_s15, %s28_s15 }
   0xe   :  { %p277_p5 = scmp.ne.s32.totalorder %s28_s15, %s276_s19  ;;  %p282_p7 = scmp.lt.s32.totalorder %s276_s19, %s276_s19 }
  0x10   :  { %p283_p8 = por %p282_p7, %p281_p6 }
  0x12   :  { %p284_p9 = pnand %p283_p8, %p277_p5 }
  0x14   :  { %287 = shalt.err (!%p284_p9)
}
  0x15   :  { %30 = dma.hbm_to_vmem [thread:$0]  %s388_s1, 128, %s28_s15, [#allocation6]  }
  0x16   :  { %308 = dma.done.wait [#allocation3], 128  }
  0x17   :  { %309 = vsyncadd [#allocation3], 4294967168 }
  0x18   :  { %310 = dma.done.wait [#allocation6], 128  }
  0x19   :  { %311 = vsyncadd [#allocation6], 4294967168  ;;  %v40_v0 = vlaneseq  ;;  %vm91_vm1 = vcmask 89088   ;;  %v54_v2 = vld [vmem:[#allocation2] sm:$0xff]  ;;  %v348_v3 = vld [vmem:[#allocation5] sm:$0xff]  ;;  %v316_v46 = vmov 0.0  }
  0x1a   :  { %v67_v22 = vadd.f32 1e-06, %v54_v2  ;;  %v78_v23 = vadd.f32 1e-06, %v348_v3  ;;  %v88_v38 = vsub.f32 %v54_v2, %v348_v3  ;;  %v227_v45 = vld [vmem:[%s389_s2] ss:$0 sm:$0xff] }
  0x1b   :  { %v345_v1 = vand.u32 127, %v40_v0  ;;  %vm173_vm15 = vcmask 7168   ;;  %s317_s25 = smov [#allocation7]  }
  0x1c   :  { %vm70_vm4 = vcmp.eq.f32.partialorder %v67_v22, inf  ;;  %vm81_vm5 = vcmp.eq.f32.partialorder %v78_v23, inf  ;;  %v73_v28 = vand.u32 2147483648, %v67_v22  ;;  %v84_v29 = vand.u32 2147483648, %v78_v23  ;;  %s214_s26 = sshll.u32 %s317_s25, 4  ;;  %s215_s26 = int_to_ptr.vmem [resolvable:$true] %s214_s26 }
  0x1d   :  { %vm42_vm0 = vcmp.lt.s32.totalorder %v345_v1, 4  ;;  %vm43_vm6 = vcmp.ge.s32.totalorder %v345_v1, 7  ;;  %vm44_vm7 = vcmp.lt.s32.totalorder %v345_v1, 10  ;;  %vm72_vm8 = vcmp.eq.f32.partialorder %v67_v22, 0.0  ;;  %s288_s27 = scalar_lea.vmem %s215_s26, 128  ;;  %p293_p11 = scmp.lt.s32.totalorder %s215_s26, %s215_s26 }
  0x1e   :  { %v119_v4 = vsel %vm42_vm0, %v54_v2, -inf  ;;  %v120_v5 = vsel %vm42_vm0, %v348_v3, -inf  ;;  %vm83_vm9 = vcmp.eq.f32.partialorder %v78_v23, 0.0  ;;  %vm45_vm10 = vmand %vm43_vm6, %vm44_vm7  ;;  %vm46_vm11 = vcmp.ge.s32.totalorder %v345_v1, 4  ;;  %p289_p10 = scmp.ne.s32.totalorder %s215_s26, %s288_s27  ;;  %p294_p12 = scmp.lt.s32.totalorder %s288_s27, %s288_s27 }
  0x1f   :  { %v121_v6 = vsel %vm91_vm1, %v119_v4, -inf  ;;  %v144_v7 = vsel %vm91_vm1, %v120_v5, -inf  ;;  %vm47_vm12 = vmand %vm46_vm11, %vm44_vm7  ;;  %vm50_vm13 = vcmp.eq.s32.totalorder %v345_v1, 10  ;;  %v103_v44 = vmul.f32 %v88_v38, %v88_v38 }
  0x20   :  { %122 = vmax.xlane.f32.xlu0 %v121_v6  ;;  %145 = vmax.xlane.f32.xlu1 %v144_v7  ;;  %v224_v47 = vsel %vm47_vm12, 1.0, %v316_v46  ;;  %v225_v48 = vsel %vm50_vm13, 1.0, %v316_v46  ;;  %vm201_vm0 = vcmp.eq.s32.totalorder %v345_v1, 2  ;;  %p295_p13 = por %p294_p12, %p293_p11 }
  0x21   :  { %v104_v53 = vmul.f32 %v225_v48, %v103_v44 }
  0x22   :  { %p296_p0 = pnand %p295_p13, %p289_p10 }
  0x23   :  { %v105_v57 = vsel %vm91_vm1, %v104_v53, 0.0 }
  0xa9   :  { %v123_v8 = vpop.xlane.xlu0 %122  ;;  %v353_v9 = vpop.xlane.xlu1 %145 }
  0xaa   :  { %vm124_vm2 = vcmp.eq.f32.partialorder %v119_v4, %v123_v8  ;;  %v147_v10 = vsub.f32 %v120_v5, %v353_v9 }
  0xab   :  { %v125_v11 = vsel %vm124_vm2, %v345_v1, 11  ;;  %vm199_vm2 = vcmp.eq.s32.totalorder %v345_v1, 0 }
  0xac   :  { %v126_v12 = vsel %vm91_vm1, %v125_v11, 2147483647  ;;  %v148_v13 = vmul.f32 1.442695, %v147_v10 }
  0xad   :  { %v128_v14 = vshra.s32 %v126_v12, 16  ;;  %v127_v18 = vand.u32 65535, %v126_v12 }
  0xae   :  { %240 = vpow2.f32 %v148_v13 }
  0xaf   :  { %v130_v15 = vcvt.s32.f32 %v128_v14  ;;  %v129_v20 = vcvt.s32.f32 %v127_v18  ;;  %242 = vrsqrt.f32 %v67_v22 }
  0xb0   :  { %244 = vrsqrt.f32 %v78_v23 }
  0xb1   :  { %131 = vmin.xlane.f32.xlu0 %v130_v15 }
  0xbb   :  { %v241_v16 = vpop.eup %240 }
  0xbc   :  { %v150_v17 = vsel %vm91_vm1, %v241_v16, 0.0  ;;  %v243_v24 = vpop.eup %242 }
  0xbd   :  { %151 = vadd.xlane.f32.xlu0 %v150_v17  ;;  %v245_v25 = vpop.eup %244  ;;  %v69_v26 = vmul.f32 %v243_v24, %v67_v22 }
  0xbe   :  { %v80_v27 = vmul.f32 %v245_v25, %v78_v23 }
  0xbf   :  { %v71_v30 = vsel %vm70_vm4, %v67_v22, %v69_v26 }
  0xc0   :  { %v82_v31 = vsel %vm81_vm5, %v78_v23, %v80_v27  ;;  %v74_v32 = vsel %vm72_vm8, %v73_v28, %v71_v30 }
  0xc1   :  { %v85_v33 = vsel %vm83_vm9, %v84_v29, %v82_v31  ;;  %v77_v34 = vsel %vm45_vm10, %v74_v32, %v54_v2 }
  0xc2   :  { %v86_v35 = vsel %vm45_vm10, %v85_v33, %v348_v3 }
  0xc3   :  { %v87_v37 = vsub.f32 %v77_v34, %v86_v35  ;;  %v57_v34 = vshrl.u32 %v40_v0, 7 }
  0xc5   :  { %v89_v43 = vmul.f32 %v87_v37, %v87_v37 }
  0xc7   :  { %v90_v52 = vmul.f32 %v224_v47, %v89_v43 }
  0xc9   :  { %v92_v56 = vsel %vm91_vm1, %v90_v52, 0.0 }
 0x13a   :  { %v132_v19 = vpop.xlane.xlu0 %131 }
 0x13b   :  { %vm133_vm3 = vcmp.eq.f32.partialorder %v130_v15, %v132_v19  ;;  %v138_v36 = vcvt.f32.s32 %v132_v19 }
 0x13c   :  { %v134_v21 = vsel %vm133_vm3, %v129_v20, inf  ;;  %vm205_vm3 = vcmp.eq.s32.totalorder %v57_v34, 0 }
 0x13d   :  { %135 = vmin.xlane.f32.xlu1 %v134_v21  ;;  %v139_v40 = vshll.u32 %v138_v36, 16 }
 0x146   :  { %v152_v58 = vpop.xlane.xlu0 %151 }
 0x147   :  { %246 = vlog2.f32 %v152_v58 }
 0x154   :  { %v247_v59 = vpop.eup %246 }
 0x155   :  { %v154_v60 = vmul.f32 0.6931472, %v247_v59 }
 0x157   :  { %v155_v61 = vadd.f32 %v154_v60, %v353_v9 }
 0x1c6   :  { %v136_v39 = vpop.xlane.xlu1 %135 }
 0x1c7   :  { %v137_v41 = vcvt.f32.s32 %v136_v39 }
 0x1c9   :  { %v140_v42 = vadd.s32 %v139_v40, %v137_v41 }
 0x1cb   :  { %vm141_vm14 = vcmp.eq.s32.totalorder %v345_v1, %v140_v42 }
 0x1cc   :  { %v226_v49 = vsel %vm141_vm14, 1.0, %v316_v46 }
 0x1cd   :  { %v156_v50 = vmul.f32 %v226_v49, %v348_v3  ;;  %v167_v51 = vmul.f32 %v227_v45, %v226_v49 }
 0x1cf   :  { %v157_v54 = vsel %vm91_vm1, %v156_v50, 0.0  ;;  %v168_v55 = vsel %vm91_vm1, %v167_v51, 0.0  ;;  %vm200_vm1 = vcmp.eq.s32.totalorder %v345_v1, 1 }
 0x1d0   :  { %158 = vadd.xlane.f32.xlu1 %v157_v54  ;;  %169 = vadd.xlane.f32.xlu0 %v168_v55 }
 0x1d4   :  { %93 = vadd.xlane.f32.xlu1 %v92_v56  ;;  %106 = vadd.xlane.f32.xlu0 %v105_v57 }
 0x259   :  { %v159_v62 = vpop.xlane.xlu1 %158  ;;  %v170_v63 = vpop.xlane.xlu0 %169 }
 0x25a   :  { %v160_v2 = vsub.f32 %v155_v61, %v159_v62  ;;  %v185_v3 = vsel %vm173_vm15, %v170_v63, 0.0 }
 0x25b   :  { %186 = vadd.xlane.f32.xlu0 %v185_v3 }
 0x25c   :  { %v172_v4 = vmul.f32 %v170_v63, %v160_v2 }
 0x25d   :  { %v94_v5 = vpop.xlane.xlu1 %93  ;;  %v107_v6 = vpop.xlane.xlu0 %106 }
 0x25e   :  { %v174_v7 = vsel %vm173_vm15, %v172_v4, 0.0  ;;  %v95_v8 = vrot.slane %v94_v5, 4  ;;  %v108_v10 = vrot.slane %v107_v6, 4 }
 0x25f   :  { %175 = vadd.xlane.f32.xlu1 %v174_v7 }
 0x260   :  { %v96_v11 = vadd.f32 %v95_v8, %v94_v5  ;;  %v109_v12 = vadd.f32 %v108_v10, %v107_v6 }
 0x262   :  { %v97_v13 = vrot.slane %v96_v11, 2  ;;  %v110_v14 = vrot.slane %v109_v12, 2 }
 0x264   :  { %v98_v15 = vadd.f32 %v97_v13, %v96_v11  ;;  %v111_v16 = vadd.f32 %v110_v14, %v109_v12 }
 0x266   :  { %v99_v17 = vrot.slane %v98_v15, 1  ;;  %v112_v9 = vrot.slane %v111_v16, 1 }
 0x268   :  { %v100_v18 = vadd.f32 %v99_v17, %v98_v15  ;;  %v113_v19 = vadd.f32 %v112_v9, %v111_v16 }
 0x26a   :  { %228 = vpush %v100_v18 }
 0x26b   :  { %230 = vpush %v113_v19 }
 0x29b   :  { %s229_s2 = spop %228 }
 0x29c   :  { %s231_s22 = spop %230  ;;  %v102_v35 = vstv %s229_s2 }
 0x29d   :  { %v115_v36 = vstv %s231_s22 }
 0x29e   :  { %v116_v39 = vadd.f32 %v115_v36, %v102_v35 }
 0x2e4   :  { %v187_v20 = vpop.xlane.xlu0 %186 }
 0x2e5   :  { %v188_v21 = vrot.slane %v187_v20, 4 }
 0x2e7   :  { %v189_v22 = vadd.f32 %v188_v21, %v187_v20 }
 0x2e8   :  { %v176_v23 = vpop.xlane.xlu1 %175 }
 0x2e9   :  { %v190_v24 = vrot.slane %v189_v22, 2  ;;  %v177_v25 = vrot.slane %v176_v23, 4 }
 0x2eb   :  { %v178_v26 = vadd.f32 %v177_v25, %v176_v23  ;;  %v191_v27 = vadd.f32 %v190_v24, %v189_v22 }
 0x2ed   :  { %v179_v28 = vrot.slane %v178_v26, 2  ;;  %v192_v30 = vrot.slane %v191_v27, 1 }
 0x2ef   :  { %v180_v29 = vadd.f32 %v179_v28, %v178_v26  ;;  %v193_v33 = vadd.f32 %v192_v30, %v191_v27 }
 0x2f1   :  { %v181_v31 = vrot.slane %v180_v29, 1 }
 0x2f3   :  { %v182_v32 = vadd.f32 %v181_v31, %v180_v29 }
 0x2f5   :  { %232 = vpush %v182_v32 }
 0x2f6   :  { %234 = vpush %v193_v33 }
 0x326   :  { %s233_s23 = spop %232 }
 0x327   :  { %v184_v37 = vstv %s233_s23  ;;  %s235_s24 = spop %234 }
 0x328   :  { %v195_v38 = vstv %s235_s24 }
 0x329   :  { %v202_v40 = vsel %vm201_vm0, %v195_v38, 0.0 }
 0x32a   :  { %v203_v41 = vsel %vm200_vm1, %v184_v37, %v202_v40 }
 0x32b   :  { %v204_v42 = vsel %vm199_vm2, %v116_v39, %v203_v41 }
 0x32c   :  { %v206_v0 = vsel %vm205_vm3, %v204_v42, 0.0 }
 0x32d   :  { %207 = vst [vmem:[#allocation7] sm:$0xff] %v206_v0 }
 0x32e   :  { %299 = shalt.err (!%p296_p0)
}
 0x32f   :  { %217 = dma.vmem_to_hbm [thread:$0]  %s215_s26, 128, %s390_s3, [#allocation4]  }
 0x330   :  { %312 = dma.done.wait [#allocation4], 128  }
 0x331   :  { %313 = vsyncadd [#allocation4], 4294967168 }
 0x332   :  { %221 = vsyncpa [#allocation3], 1 }
 0x333   :  { %222 = vsyncpa [#allocation6], 1 }
 0x334   :  { %223 = vsyncpa [#allocation4], 1 }

</bundles_post_ra>
